<compile_context>
chip_gen: v7x
topology: tpu7x:2x2x1
jax: 0.10.0
libtpu: 0.0.40
codegen_flags: <defaults>
</compile_context>

<pallas_src>
import math

import jax
import jax.numpy as jnp
from jax.experimental import pallas as pl
from jax.experimental.pallas import tpu as pltpu

STATE_DIM = 3        # pendulum observation: (cos th, sin th, thdot)
ACTION_NUM = 1       # pendulum torque
HIDDEN = 4
ACTION_RANGE = 4.0
LOG_2PI = math.log(2.0 * math.pi)
N_OUT_ROWS = 2 * ACTION_NUM + 1   # [act rows | logp row | entropy rows]

# Offsets into the packed scalar parameter slab (SMEM).
W1_OFF = 0
B1_OFF = W1_OFF + HIDDEN * STATE_DIM          # 12
W2_OFF = B1_OFF + HIDDEN                      # 16
B2_OFF = W2_OFF + HIDDEN * HIDDEN             # 32
WMU_OFF = B2_OFF + HIDDEN                     # 36
BMU_OFF = WMU_OFF + ACTION_NUM * HIDDEN       # 40
WSIG_OFF = BMU_OFF + ACTION_NUM               # 41
BSIG_OFF = WSIG_OFF + ACTION_NUM * HIDDEN     # 45
N_PARAMS = BSIG_OFF + ACTION_NUM              # 46
PARAMS_PAD = 64


def actor_kernel(params_ref, x_ref, eps_ref, out_ref):
    """x_ref: (STATE_DIM, R, 128), eps_ref: (ACTION_NUM, R, 128),
    out_ref: (2*ACTION_NUM+1, R, 128), params_ref: (PARAMS_PAD,) in SMEM.

    Each (R, 128) plane is one feature over the batch (batch element n = r*128+c),
    so every elementwise / transcendental op runs at full vreg density.
    The weights are tiny (3x4 / 4x4 / 4x2), so the matmuls are unrolled
    scalar-broadcast multiply-adds on the VPU (no MXU)."""
    x = [x_ref[k] for k in range(STATE_DIM)]

    # fc1 + relu
    h1 = []
    for o in range(HIDDEN):
        acc = params_ref[B1_OFF + o] + params_ref[W1_OFF + o * STATE_DIM] * x[0]
        for k in range(1, STATE_DIM):
            acc = acc + params_ref[W1_OFF + o * STATE_DIM + k] * x[k]
        h1.append(jnp.maximum(acc, 0.0))

    # fc2 + relu
    h2 = []
    for o in range(HIDDEN):
        acc = params_ref[B2_OFF + o] + params_ref[W2_OFF + o * HIDDEN] * h1[0]
        for k in range(1, HIDDEN):
            acc = acc + params_ref[W2_OFF + o * HIDDEN + k] * h1[k]
        h2.append(jnp.maximum(acc, 0.0))

    # mu / sigma heads + Normal sample / log_prob / entropy + tanh squash
    logp_sum = None
    for a in range(ACTION_NUM):
        mu = params_ref[WMU_OFF + a * HIDDEN] * h2[0]
        z = params_ref[WSIG_OFF + a * HIDDEN] * h2[0]
        for k in range(1, HIDDEN):
            mu = mu + params_ref[WMU_OFF + a * HIDDEN + k] * h2[k]
            z = z + params_ref[WSIG_OFF + a * HIDDEN + k] * h2[k]
        mu = mu + params_ref[BMU_OFF + a]
        z = z + params_ref[BSIG_OFF + a]

        # softplus (matches torch.nn.functional.softplus, threshold=20)
        sigma = jnp.where(z > 20.0, z, jnp.log1p(jnp.exp(jnp.minimum(z, 20.0))))

        eps = eps_ref[a]
        act = mu + sigma * eps                       # dist.rsample()
        log_sigma = jnp.log(sigma)

        # Normal entropy / log_prob; ((act - mu)/sigma) == eps by construction.
        ent = 0.5 + 0.5 * LOG_2PI + log_sigma
        logp = -0.5 * (eps * eps) - log_sigma - 0.5 * LOG_2PI

        # tanh squash + range scaling, with log-prob correction
        t = jnp.tanh(act)
        logp = logp - jnp.log(ACTION_RANGE * (1.0 - t * t) + 1e-6)

        # Direct lane-dense row stores (no concatenate, no cross-sublane reduce).
        out_ref[a] = t * ACTION_RANGE
        out_ref[ACTION_NUM + 1 + a] = ent
        logp_sum = logp if logp_sum is None else logp_sum + logp

    out_ref[ACTION_NUM] = logp_sum


def init_actor_params(key):
    """Deterministic PyTorch-style Linear init: U(-1/sqrt(fan_in), 1/sqrt(fan_in)).

    Weights are stored PyTorch-style as (out_features, in_features); biases as
    (out_features,)."""
    def linear(key, fan_in, fan_out):
        kw, kb = jax.random.split(key)
        bound = 1.0 / math.sqrt(fan_in)
        w = jax.random.uniform(kw, (fan_out, fan_in), jnp.float32, -bound, bound)
        b = jax.random.uniform(kb, (fan_out,), jnp.float32, -bound, bound)
        return w, b

    k1, k2, k3, k4 = jax.random.split(key, 4)
    w1, b1 = linear(k1, STATE_DIM, HIDDEN)
    w2, b2 = linear(k2, HIDDEN, HIDDEN)
    wmu, bmu = linear(k3, HIDDEN, ACTION_NUM)
    wsig, bsig = linear(k4, HIDDEN, ACTION_NUM)
    return (w1, b1, w2, b2, wmu, bmu, wsig, bsig)


def pack_params(params):
    """Pack all 46 scalars into one padded f32 slab for SMEM residence."""
    w1, b1, w2, b2, wmu, bmu, wsig, bsig = params
    flat = jnp.concatenate([
        w1.reshape(-1), b1.reshape(-1),
        w2.reshape(-1), b2.reshape(-1),
        wmu.reshape(-1), bmu.reshape(-1),
        wsig.reshape(-1), bsig.reshape(-1),
    ]).astype(jnp.float32)
    return jnp.pad(flat, (0, PARAMS_PAD - N_PARAMS))


def _round_up(x, m):
    return ((x + m - 1) // m) * m


def actor_forward(state, eps, params, target_lanes=128 * 1024):
    """state: (B, STATE_DIM) f32, eps: (B, ACTION_NUM) f32 standard-normal noise.

    Returns (act (B, ACTION_NUM), act_log_prob (B, 1), act_entropy (B, ACTION_NUM)).
    """
    B = state.shape[0]
    packed_params = pack_params(params)

    # --- tile selection ------------------------------------------------------
    # rows = batch/128; keep rows-per-tile a multiple of 8 (dense 8x128 vregs),
    # cap at ~128K lanes/tile (~7 MiB double-buffered, fits every chip's scoped
    # VMEM default), and split into >= 2 tiles when possible for v7x megacore.
    r_needed = -(-B // 128)
    target_r = max(8, target_lanes // 128)
    tile_r = max(8, min(target_r, _round_up(-(-r_needed // 2), 8)))
    r_total = _round_up(max(r_needed, 1), tile_r)
    b_pad = r_total * 128
    grid = (r_total // tile_r,)

    # --- single pad + transpose (+ free row-major reshape) into lane-dense planes
    pad = b_pad - B
    x_t = jnp.pad(state, ((0, pad), (0, 0))).T.reshape(STATE_DIM, r_total, 128)
    eps_t = jnp.pad(eps, ((0, pad), (0, 0))).T.reshape(ACTION_NUM, r_total, 128)

    packed = pl.pallas_call(
        actor_kernel,
        out_shape=jax.ShapeDtypeStruct((N_OUT_ROWS, r_total, 128), jnp.float32),
        grid=grid,
        in_specs=[
            pl.BlockSpec(memory_space=pltpu.MemorySpace.SMEM),            # params slab
            pl.BlockSpec((STATE_DIM, tile_r, 128), lambda i: (0, i, 0)),  # state planes
            pl.BlockSpec((ACTION_NUM, tile_r, 128), lambda i: (0, i, 0)), # eps planes
        ],
        out_specs=pl.BlockSpec((N_OUT_ROWS, tile_r, 128), lambda i: (0, i, 0)),
        compiler_params=pltpu.CompilerParams(
            dimension_semantics=("parallel",)),
    )(packed_params, x_t, eps_t)

    # --- single transpose on the way out, then cheap column slices -----------
    flat = packed.reshape(N_OUT_ROWS, b_pad)[:, :B].T                # (B, 2*A+1)
    act = flat[:, 0:ACTION_NUM]
    act_log_prob = flat[:, ACTION_NUM:ACTION_NUM + 1]
    act_entropy = flat[:, ACTION_NUM + 1:]
    return act, act_log_prob, act_entropy


def _actor_reference(state, eps, params):
    """Pure-JAX reference of the PyTorch forward (same math, original layout)."""
    w1, b1, w2, b2, wmu, bmu, wsig, bsig = params
    h1 = jnp.maximum(state @ w1.T + b1, 0.0)
    h2 = jnp.maximum(h1 @ w2.T + b2, 0.0)
    mu = h2 @ wmu.T + bmu
    z = h2 @ wsig.T + bsig
    sigma = jnp.where(z > 20.0, z, jnp.log1p(jnp.exp(jnp.minimum(z, 20.0))))
    act = mu + sigma * eps
    ent = 0.5 + 0.5 * LOG_2PI + jnp.log(sigma)
    logp = -0.5 * ((act - mu) / sigma) ** 2 - jnp.log(sigma) - 0.5 * LOG_2PI
    t = jnp.tanh(act)
    act_out = t * ACTION_RANGE
    logp = logp - jnp.log(ACTION_RANGE * (1.0 - t * t) + 1e-6)
    return act_out, jnp.sum(logp, axis=1, keepdims=True), ent


if __name__ == "__main__":
    key = jax.random.PRNGKey(0)
    k_params, k_state, k_eps = jax.random.split(key, 3)
    params = init_actor_params(k_params)

    # batch=8   -> single tile (grid=1), heavy padding path
    # batch=1200-> two tiles (grid=2, megacore-shardable), partial last batch rows
    for batch in (8, 1200):
        ks = jax.random.fold_in(k_state, batch)
        ke = jax.random.fold_in(k_eps, batch)
        state = jax.random.normal(ks, (batch, STATE_DIM), dtype=jnp.float32)
        eps = jax.random.normal(ke, (batch, ACTION_NUM), dtype=jnp.float32)

        act, act_log_prob, act_entropy = actor_forward(state, eps, params)
        jax.block_until_ready((act, act_log_prob, act_entropy))

        assert act.shape == (batch, ACTION_NUM)
        assert act_log_prob.shape == (batch, 1)
        assert act_entropy.shape == (batch, ACTION_NUM)

        ref_act, ref_logp, ref_ent = _actor_reference(state, eps, params)
        assert jnp.allclose(act, ref_act, atol=1e-2, rtol=1e-2)
        assert jnp.allclose(act_log_prob, ref_logp, atol=1e-2, rtol=1e-2)
        assert jnp.allclose(act_entropy, ref_ent, atol=1e-2, rtol=1e-2)

    print("KERNEL_OK")
</pallas_src>

<mosaic_0001>
module attributes {stable_mosaic.version = 11 : i64} {
  func.func @actor_kernel(%arg0: i32, %arg1: memref<64xf32, #tpu.memory_space<smem>>, %arg2: memref<3x8x128xf32, #tpu.memory_space<vmem>>, %arg3: memref<1x8x128xf32, #tpu.memory_space<vmem>>, %arg4: memref<3x8x128xf32, #tpu.memory_space<vmem>>) attributes {dimension_semantics = [#tpu.dimension_semantics<parallel>], iteration_bounds = array<i64: 1>, scalar_prefetch = 0 : i64, scratch_operands = 0 : i64, tpu.core_type = #tpu.core_type<tc>, window_params = [{transform_indices = @transform_0, window_bounds = array<i64: 64>}, {transform_indices = @transform_1, window_bounds = array<i64: 3, 8, 128>}, {transform_indices = @transform_2, window_bounds = array<i64: 1, 8, 128>}, {transform_indices = @transform_3, window_bounds = array<i64: 3, 8, 128>}]} {
    %c0 = arith.constant 0 : index
    %c0_0 = arith.constant 0 : index
    %c0_1 = arith.constant 0 : index
    %0 = vector.load %arg2[%c0, %c0_0, %c0_1] : memref<3x8x128xf32, #tpu.memory_space<vmem>>, vector<1x8x128xf32>
    %1 = vector.shape_cast %0 : vector<1x8x128xf32> to vector<8x128xf32>
    %c1 = arith.constant 1 : index
    %c0_2 = arith.constant 0 : index
    %c0_3 = arith.constant 0 : index
    %2 = vector.load %arg2[%c1, %c0_2, %c0_3] : memref<3x8x128xf32, #tpu.memory_space<vmem>>, vector<1x8x128xf32>
    %3 = vector.shape_cast %2 : vector<1x8x128xf32> to vector<8x128xf32>
    %c2 = arith.constant 2 : index
    %c0_4 = arith.constant 0 : index
    %c0_5 = arith.constant 0 : index
    %4 = vector.load %arg2[%c2, %c0_4, %c0_5] : memref<3x8x128xf32, #tpu.memory_space<vmem>>, vector<1x8x128xf32>
    %5 = vector.shape_cast %4 : vector<1x8x128xf32> to vector<8x128xf32>
    %c12 = arith.constant 12 : index
    %6 = memref.load %arg1[%c12] : memref<64xf32, #tpu.memory_space<smem>>
    %c0_6 = arith.constant 0 : index
    %7 = memref.load %arg1[%c0_6] : memref<64xf32, #tpu.memory_space<smem>>
    %8 = vector.broadcast %7 : f32 to vector<8x128xf32>
    %9 = arith.mulf %8, %1 : vector<8x128xf32>
    %10 = vector.broadcast %6 : f32 to vector<8x128xf32>
    %11 = arith.addf %10, %9 : vector<8x128xf32>
    %c1_7 = arith.constant 1 : index
    %12 = memref.load %arg1[%c1_7] : memref<64xf32, #tpu.memory_space<smem>>
    %13 = vector.broadcast %12 : f32 to vector<8x128xf32>
    %14 = arith.mulf %13, %3 : vector<8x128xf32>
    %15 = arith.addf %11, %14 : vector<8x128xf32>
    %c2_8 = arith.constant 2 : index
    %16 = memref.load %arg1[%c2_8] : memref<64xf32, #tpu.memory_space<smem>>
    %17 = vector.broadcast %16 : f32 to vector<8x128xf32>
    %18 = arith.mulf %17, %5 : vector<8x128xf32>
    %19 = arith.addf %15, %18 : vector<8x128xf32>
    %cst = arith.constant 0.000000e+00 : f32
    %20 = vector.broadcast %cst : f32 to vector<8x128xf32>
    %21 = arith.maximumf %19, %20 : vector<8x128xf32>
    %c13 = arith.constant 13 : index
    %22 = memref.load %arg1[%c13] : memref<64xf32, #tpu.memory_space<smem>>
    %c3 = arith.constant 3 : index
    %23 = memref.load %arg1[%c3] : memref<64xf32, #tpu.memory_space<smem>>
    %24 = vector.broadcast %23 : f32 to vector<8x128xf32>
    %25 = arith.mulf %24, %1 : vector<8x128xf32>
    %26 = vector.broadcast %22 : f32 to vector<8x128xf32>
    %27 = arith.addf %26, %25 : vector<8x128xf32>
    %c4 = arith.constant 4 : index
    %28 = memref.load %arg1[%c4] : memref<64xf32, #tpu.memory_space<smem>>
    %29 = vector.broadcast %28 : f32 to vector<8x128xf32>
    %30 = arith.mulf %29, %3 : vector<8x128xf32>
    %31 = arith.addf %27, %30 : vector<8x128xf32>
    %c5 = arith.constant 5 : index
    %32 = memref.load %arg1[%c5] : memref<64xf32, #tpu.memory_space<smem>>
    %33 = vector.broadcast %32 : f32 to vector<8x128xf32>
    %34 = arith.mulf %33, %5 : vector<8x128xf32>
    %35 = arith.addf %31, %34 : vector<8x128xf32>
    %cst_9 = arith.constant 0.000000e+00 : f32
    %36 = vector.broadcast %cst_9 : f32 to vector<8x128xf32>
    %37 = arith.maximumf %35, %36 : vector<8x128xf32>
    %c14 = arith.constant 14 : index
    %38 = memref.load %arg1[%c14] : memref<64xf32, #tpu.memory_space<smem>>
    %c6 = arith.constant 6 : index
    %39 = memref.load %arg1[%c6] : memref<64xf32, #tpu.memory_space<smem>>
    %40 = vector.broadcast %39 : f32 to vector<8x128xf32>
    %41 = arith.mulf %40, %1 : vector<8x128xf32>
    %42 = vector.broadcast %38 : f32 to vector<8x128xf32>
    %43 = arith.addf %42, %41 : vector<8x128xf32>
    %c7 = arith.constant 7 : index
    %44 = memref.load %arg1[%c7] : memref<64xf32, #tpu.memory_space<smem>>
    %45 = vector.broadcast %44 : f32 to vector<8x128xf32>
    %46 = arith.mulf %45, %3 : vector<8x128xf32>
    %47 = arith.addf %43, %46 : vector<8x128xf32>
    %c8 = arith.constant 8 : index
    %48 = memref.load %arg1[%c8] : memref<64xf32, #tpu.memory_space<smem>>
    %49 = vector.broadcast %48 : f32 to vector<8x128xf32>
    %50 = arith.mulf %49, %5 : vector<8x128xf32>
    %51 = arith.addf %47, %50 : vector<8x128xf32>
    %cst_10 = arith.constant 0.000000e+00 : f32
    %52 = vector.broadcast %cst_10 : f32 to vector<8x128xf32>
    %53 = arith.maximumf %51, %52 : vector<8x128xf32>
    %c15 = arith.constant 15 : index
    %54 = memref.load %arg1[%c15] : memref<64xf32, #tpu.memory_space<smem>>
    %c9 = arith.constant 9 : index
    %55 = memref.load %arg1[%c9] : memref<64xf32, #tpu.memory_space<smem>>
    %56 = vector.broadcast %55 : f32 to vector<8x128xf32>
    %57 = arith.mulf %56, %1 : vector<8x128xf32>
    %58 = vector.broadcast %54 : f32 to vector<8x128xf32>
    %59 = arith.addf %58, %57 : vector<8x128xf32>
    %c10 = arith.constant 10 : index
    %60 = memref.load %arg1[%c10] : memref<64xf32, #tpu.memory_space<smem>>
    %61 = vector.broadcast %60 : f32 to vector<8x128xf32>
    %62 = arith.mulf %61, %3 : vector<8x128xf32>
    %63 = arith.addf %59, %62 : vector<8x128xf32>
    %c11 = arith.constant 11 : index
    %64 = memref.load %arg1[%c11] : memref<64xf32, #tpu.memory_space<smem>>
    %65 = vector.broadcast %64 : f32 to vector<8x128xf32>
    %66 = arith.mulf %65, %5 : vector<8x128xf32>
    %67 = arith.addf %63, %66 : vector<8x128xf32>
    %cst_11 = arith.constant 0.000000e+00 : f32
    %68 = vector.broadcast %cst_11 : f32 to vector<8x128xf32>
    %69 = arith.maximumf %67, %68 : vector<8x128xf32>
    %c32 = arith.constant 32 : index
    %70 = memref.load %arg1[%c32] : memref<64xf32, #tpu.memory_space<smem>>
    %c16 = arith.constant 16 : index
    %71 = memref.load %arg1[%c16] : memref<64xf32, #tpu.memory_space<smem>>
    %72 = vector.broadcast %71 : f32 to vector<8x128xf32>
    %73 = arith.mulf %72, %21 : vector<8x128xf32>
    %74 = vector.broadcast %70 : f32 to vector<8x128xf32>
    %75 = arith.addf %74, %73 : vector<8x128xf32>
    %c17 = arith.constant 17 : index
    %76 = memref.load %arg1[%c17] : memref<64xf32, #tpu.memory_space<smem>>
    %77 = vector.broadcast %76 : f32 to vector<8x128xf32>
    %78 = arith.mulf %77, %37 : vector<8x128xf32>
    %79 = arith.addf %75, %78 : vector<8x128xf32>
    %c18 = arith.constant 18 : index
    %80 = memref.load %arg1[%c18] : memref<64xf32, #tpu.memory_space<smem>>
    %81 = vector.broadcast %80 : f32 to vector<8x128xf32>
    %82 = arith.mulf %81, %53 : vector<8x128xf32>
    %83 = arith.addf %79, %82 : vector<8x128xf32>
    %c19 = arith.constant 19 : index
    %84 = memref.load %arg1[%c19] : memref<64xf32, #tpu.memory_space<smem>>
    %85 = vector.broadcast %84 : f32 to vector<8x128xf32>
    %86 = arith.mulf %85, %69 : vector<8x128xf32>
    %87 = arith.addf %83, %86 : vector<8x128xf32>
    %cst_12 = arith.constant 0.000000e+00 : f32
    %88 = vector.broadcast %cst_12 : f32 to vector<8x128xf32>
    %89 = arith.maximumf %87, %88 : vector<8x128xf32>
    %c33 = arith.constant 33 : index
    %90 = memref.load %arg1[%c33] : memref<64xf32, #tpu.memory_space<smem>>
    %c20 = arith.constant 20 : index
    %91 = memref.load %arg1[%c20] : memref<64xf32, #tpu.memory_space<smem>>
    %92 = vector.broadcast %91 : f32 to vector<8x128xf32>
    %93 = arith.mulf %92, %21 : vector<8x128xf32>
    %94 = vector.broadcast %90 : f32 to vector<8x128xf32>
    %95 = arith.addf %94, %93 : vector<8x128xf32>
    %c21 = arith.constant 21 : index
    %96 = memref.load %arg1[%c21] : memref<64xf32, #tpu.memory_space<smem>>
    %97 = vector.broadcast %96 : f32 to vector<8x128xf32>
    %98 = arith.mulf %97, %37 : vector<8x128xf32>
    %99 = arith.addf %95, %98 : vector<8x128xf32>
    %c22 = arith.constant 22 : index
    %100 = memref.load %arg1[%c22] : memref<64xf32, #tpu.memory_space<smem>>
    %101 = vector.broadcast %100 : f32 to vector<8x128xf32>
    %102 = arith.mulf %101, %53 : vector<8x128xf32>
    %103 = arith.addf %99, %102 : vector<8x128xf32>
    %c23 = arith.constant 23 : index
    %104 = memref.load %arg1[%c23] : memref<64xf32, #tpu.memory_space<smem>>
    %105 = vector.broadcast %104 : f32 to vector<8x128xf32>
    %106 = arith.mulf %105, %69 : vector<8x128xf32>
    %107 = arith.addf %103, %106 : vector<8x128xf32>
    %cst_13 = arith.constant 0.000000e+00 : f32
    %108 = vector.broadcast %cst_13 : f32 to vector<8x128xf32>
    %109 = arith.maximumf %107, %108 : vector<8x128xf32>
    %c34 = arith.constant 34 : index
    %110 = memref.load %arg1[%c34] : memref<64xf32, #tpu.memory_space<smem>>
    %c24 = arith.constant 24 : index
    %111 = memref.load %arg1[%c24] : memref<64xf32, #tpu.memory_space<smem>>
    %112 = vector.broadcast %111 : f32 to vector<8x128xf32>
    %113 = arith.mulf %112, %21 : vector<8x128xf32>
    %114 = vector.broadcast %110 : f32 to vector<8x128xf32>
    %115 = arith.addf %114, %113 : vector<8x128xf32>
    %c25 = arith.constant 25 : index
    %116 = memref.load %arg1[%c25] : memref<64xf32, #tpu.memory_space<smem>>
    %117 = vector.broadcast %116 : f32 to vector<8x128xf32>
    %118 = arith.mulf %117, %37 : vector<8x128xf32>
    %119 = arith.addf %115, %118 : vector<8x128xf32>
    %c26 = arith.constant 26 : index
    %120 = memref.load %arg1[%c26] : memref<64xf32, #tpu.memory_space<smem>>
    %121 = vector.broadcast %120 : f32 to vector<8x128xf32>
    %122 = arith.mulf %121, %53 : vector<8x128xf32>
    %123 = arith.addf %119, %122 : vector<8x128xf32>
    %c27 = arith.constant 27 : index
    %124 = memref.load %arg1[%c27] : memref<64xf32, #tpu.memory_space<smem>>
    %125 = vector.broadcast %124 : f32 to vector<8x128xf32>
    %126 = arith.mulf %125, %69 : vector<8x128xf32>
    %127 = arith.addf %123, %126 : vector<8x128xf32>
    %cst_14 = arith.constant 0.000000e+00 : f32
    %128 = vector.broadcast %cst_14 : f32 to vector<8x128xf32>
    %129 = arith.maximumf %127, %128 : vector<8x128xf32>
    %c35 = arith.constant 35 : index
    %130 = memref.load %arg1[%c35] : memref<64xf32, #tpu.memory_space<smem>>
    %c28 = arith.constant 28 : index
    %131 = memref.load %arg1[%c28] : memref<64xf32, #tpu.memory_space<smem>>
    %132 = vector.broadcast %131 : f32 to vector<8x128xf32>
    %133 = arith.mulf %132, %21 : vector<8x128xf32>
    %134 = vector.broadcast %130 : f32 to vector<8x128xf32>
    %135 = arith.addf %134, %133 : vector<8x128xf32>
    %c29 = arith.constant 29 : index
    %136 = memref.load %arg1[%c29] : memref<64xf32, #tpu.memory_space<smem>>
    %137 = vector.broadcast %136 : f32 to vector<8x128xf32>
    %138 = arith.mulf %137, %37 : vector<8x128xf32>
    %139 = arith.addf %135, %138 : vector<8x128xf32>
    %c30 = arith.constant 30 : index
    %140 = memref.load %arg1[%c30] : memref<64xf32, #tpu.memory_space<smem>>
    %141 = vector.broadcast %140 : f32 to vector<8x128xf32>
    %142 = arith.mulf %141, %53 : vector<8x128xf32>
    %143 = arith.addf %139, %142 : vector<8x128xf32>
    %c31 = arith.constant 31 : index
    %144 = memref.load %arg1[%c31] : memref<64xf32, #tpu.memory_space<smem>>
    %145 = vector.broadcast %144 : f32 to vector<8x128xf32>
    %146 = arith.mulf %145, %69 : vector<8x128xf32>
    %147 = arith.addf %143, %146 : vector<8x128xf32>
    %cst_15 = arith.constant 0.000000e+00 : f32
    %148 = vector.broadcast %cst_15 : f32 to vector<8x128xf32>
    %149 = arith.maximumf %147, %148 : vector<8x128xf32>
    %c36 = arith.constant 36 : index
    %150 = memref.load %arg1[%c36] : memref<64xf32, #tpu.memory_space<smem>>
    %151 = vector.broadcast %150 : f32 to vector<8x128xf32>
    %152 = arith.mulf %151, %89 : vector<8x128xf32>
    %c41 = arith.constant 41 : index
    %153 = memref.load %arg1[%c41] : memref<64xf32, #tpu.memory_space<smem>>
    %154 = vector.broadcast %153 : f32 to vector<8x128xf32>
    %155 = arith.mulf %154, %89 : vector<8x128xf32>
    %c37 = arith.constant 37 : index
    %156 = memref.load %arg1[%c37] : memref<64xf32, #tpu.memory_space<smem>>
    %157 = vector.broadcast %156 : f32 to vector<8x128xf32>
    %158 = arith.mulf %157, %109 : vector<8x128xf32>
    %159 = arith.addf %152, %158 : vector<8x128xf32>
    %c42 = arith.constant 42 : index
    %160 = memref.load %arg1[%c42] : memref<64xf32, #tpu.memory_space<smem>>
    %161 = vector.broadcast %160 : f32 to vector<8x128xf32>
    %162 = arith.mulf %161, %109 : vector<8x128xf32>
    %163 = arith.addf %155, %162 : vector<8x128xf32>
    %c38 = arith.constant 38 : index
    %164 = memref.load %arg1[%c38] : memref<64xf32, #tpu.memory_space<smem>>
    %165 = vector.broadcast %164 : f32 to vector<8x128xf32>
    %166 = arith.mulf %165, %129 : vector<8x128xf32>
    %167 = arith.addf %159, %166 : vector<8x128xf32>
    %c43 = arith.constant 43 : index
    %168 = memref.load %arg1[%c43] : memref<64xf32, #tpu.memory_space<smem>>
    %169 = vector.broadcast %168 : f32 to vector<8x128xf32>
    %170 = arith.mulf %169, %129 : vector<8x128xf32>
    %171 = arith.addf %163, %170 : vector<8x128xf32>
    %c39 = arith.constant 39 : index
    %172 = memref.load %arg1[%c39] : memref<64xf32, #tpu.memory_space<smem>>
    %173 = vector.broadcast %172 : f32 to vector<8x128xf32>
    %174 = arith.mulf %173, %149 : vector<8x128xf32>
    %175 = arith.addf %167, %174 : vector<8x128xf32>
    %c44 = arith.constant 44 : index
    %176 = memref.load %arg1[%c44] : memref<64xf32, #tpu.memory_space<smem>>
    %177 = vector.broadcast %176 : f32 to vector<8x128xf32>
    %178 = arith.mulf %177, %149 : vector<8x128xf32>
    %179 = arith.addf %171, %178 : vector<8x128xf32>
    %c40 = arith.constant 40 : index
    %180 = memref.load %arg1[%c40] : memref<64xf32, #tpu.memory_space<smem>>
    %181 = vector.broadcast %180 : f32 to vector<8x128xf32>
    %182 = arith.addf %175, %181 : vector<8x128xf32>
    %c45 = arith.constant 45 : index
    %183 = memref.load %arg1[%c45] : memref<64xf32, #tpu.memory_space<smem>>
    %184 = vector.broadcast %183 : f32 to vector<8x128xf32>
    %185 = arith.addf %179, %184 : vector<8x128xf32>
    %cst_16 = arith.constant 2.000000e+01 : f32
    %186 = vector.broadcast %cst_16 : f32 to vector<8x128xf32>
    %187 = arith.cmpf ogt, %185, %186 : vector<8x128xf32>
    %cst_17 = arith.constant 2.000000e+01 : f32
    %188 = vector.broadcast %cst_17 : f32 to vector<8x128xf32>
    %189 = arith.minimumf %185, %188 : vector<8x128xf32>
    %190 = math.exp %189 : vector<8x128xf32>
    %191 = math.log1p %190 : vector<8x128xf32>
    %192 = arith.select %187, %185, %191 : vector<8x128xi1>, vector<8x128xf32>
    %c0_18 = arith.constant 0 : index
    %c0_19 = arith.constant 0 : index
    %c0_20 = arith.constant 0 : index
    %193 = vector.load %arg3[%c0_18, %c0_19, %c0_20] : memref<1x8x128xf32, #tpu.memory_space<vmem>>, vector<1x8x128xf32>
    %194 = vector.shape_cast %193 : vector<1x8x128xf32> to vector<8x128xf32>
    %195 = arith.mulf %192, %194 : vector<8x128xf32>
    %196 = arith.addf %182, %195 : vector<8x128xf32>
    %197 = math.log %192 : vector<8x128xf32>
    %cst_21 = arith.constant 1.41893852 : f32
    %198 = vector.broadcast %cst_21 : f32 to vector<8x128xf32>
    %199 = arith.addf %198, %197 : vector<8x128xf32>
    %200 = arith.mulf %194, %194 : vector<8x128xf32>
    %cst_22 = arith.constant -5.000000e-01 : f32
    %201 = vector.broadcast %cst_22 : f32 to vector<8x128xf32>
    %202 = arith.mulf %201, %200 : vector<8x128xf32>
    %203 = arith.subf %202, %197 : vector<8x128xf32>
    %cst_23 = arith.constant 0.918938517 : f32
    %204 = vector.broadcast %cst_23 : f32 to vector<8x128xf32>
    %205 = arith.subf %203, %204 : vector<8x128xf32>
    %206 = math.tanh %196 : vector<8x128xf32>
    %207 = arith.mulf %206, %206 : vector<8x128xf32>
    %cst_24 = arith.constant 1.000000e+00 : f32
    %208 = vector.broadcast %cst_24 : f32 to vector<8x128xf32>
    %209 = arith.subf %208, %207 : vector<8x128xf32>
    %cst_25 = arith.constant 4.000000e+00 : f32
    %210 = vector.broadcast %cst_25 : f32 to vector<8x128xf32>
    %211 = arith.mulf %210, %209 : vector<8x128xf32>
    %cst_26 = arith.constant 9.99999997E-7 : f32
    %212 = vector.broadcast %cst_26 : f32 to vector<8x128xf32>
    %213 = arith.addf %211, %212 : vector<8x128xf32>
    %214 = math.log %213 : vector<8x128xf32>
    %215 = arith.subf %205, %214 : vector<8x128xf32>
    %cst_27 = arith.constant 4.000000e+00 : f32
    %216 = vector.broadcast %cst_27 : f32 to vector<8x128xf32>
    %217 = arith.mulf %206, %216 : vector<8x128xf32>
    %c0_28 = arith.constant 0 : index
    %c0_29 = arith.constant 0 : index
    %c0_30 = arith.constant 0 : index
    %218 = vector.load %arg4[%c0_28, %c0_29, %c0_30] : memref<3x8x128xf32, #tpu.memory_space<vmem>>, vector<1x8x128xf32>
    %219 = vector.shape_cast %218 : vector<1x8x128xf32> to vector<8x128xf32>
    %220 = vector.shape_cast %217 : vector<8x128xf32> to vector<1x8x128xf32>
    tpu.vector_store %arg4[%c0_28, %c0_29, %c0_30], %220 {strides = array<i32>} : memref<3x8x128xf32, #tpu.memory_space<vmem>>, vector<1x8x128xf32>,
    %c2_31 = arith.constant 2 : index
    %c0_32 = arith.constant 0 : index
    %c0_33 = arith.constant 0 : index
    %221 = vector.load %arg4[%c2_31, %c0_32, %c0_33] : memref<3x8x128xf32, #tpu.memory_space<vmem>>, vector<1x8x128xf32>
    %222 = vector.shape_cast %221 : vector<1x8x128xf32> to vector<8x128xf32>
    %223 = vector.shape_cast %199 : vector<8x128xf32> to vector<1x8x128xf32>
    tpu.vector_store %arg4[%c2_31, %c0_32, %c0_33], %223 {strides = array<i32>} : memref<3x8x128xf32, #tpu.memory_space<vmem>>, vector<1x8x128xf32>,
    %c1_34 = arith.constant 1 : index
    %c0_35 = arith.constant 0 : index
    %c0_36 = arith.constant 0 : index
    %224 = vector.load %arg4[%c1_34, %c0_35, %c0_36] : memref<3x8x128xf32, #tpu.memory_space<vmem>>, vector<1x8x128xf32>
    %225 = vector.shape_cast %224 : vector<1x8x128xf32> to vector<8x128xf32>
    %226 = vector.shape_cast %215 : vector<8x128xf32> to vector<1x8x128xf32>
    tpu.vector_store %arg4[%c1_34, %c0_35, %c0_36], %226 {strides = array<i32>} : memref<3x8x128xf32, #tpu.memory_space<vmem>>, vector<1x8x128xf32>,
    return
  }
  func.func @transform_0(%arg0: i32) -> i32 {
    %c0_i32 = arith.constant 0 : i32
    %c0_i32_0 = arith.constant 0 : i32
    return %c0_i32 : i32
  }
  func.func @transform_1(%arg0: i32) -> (i32, i32, i32) {
    %c0_i32 = arith.constant 0 : i32
    %c0_i32_0 = arith.constant 0 : i32
    %c0_i32_1 = arith.constant 0 : i32
    return %c0_i32, %arg0, %c0_i32_0 : i32, i32, i32
  }
  func.func @transform_2(%arg0: i32) -> (i32, i32, i32) {
    %c0_i32 = arith.constant 0 : i32
    %c0_i32_0 = arith.constant 0 : i32
    %c0_i32_1 = arith.constant 0 : i32
    return %c0_i32, %arg0, %c0_i32_0 : i32, i32, i32
  }
  func.func @transform_3(%arg0: i32) -> (i32, i32, i32) {
    %c0_i32 = arith.constant 0 : i32
    %c0_i32_0 = arith.constant 0 : i32
    %c0_i32_1 = arith.constant 0 : i32
    return %c0_i32, %arg0, %c0_i32_0 : i32, i32, i32
  }
}

</mosaic_0001>

<bundles_post_ra>
// kernel: tpu_custom_call.1
= control target key start
LH: loop header
LB: loop body
LE: loop exit
PB: predicated region body
PF: predicated region fallthrough
CT: control target
= control target key end

     0   :  { %8 = vsyncpa [#allocation5], 0  ;;  %s614_s0 = inlined_call_operand.hbm [shape: f32[64], index: 0, kind: input, shape index: {}]   ;;  %s615_s1 = inlined_call_operand.hbm [shape: f32[3,8,128], index: 1, kind: input, shape index: {}]   ;;  %s616_s2 = inlined_call_operand.hbm [shape: f32[1,8,128], index: 2, kind: input, shape index: {}]   ;;  %s617_s3 = inlined_call_operand.hbm [shape: f32[3,8,128], index: 3, kind: output, shape index: {}]  }
   0x1   :  { %9 = vsyncpa [#allocation3], 0 }
   0x2   :  { %10 = vsyncpa [#allocation8], 0 }
   0x3   :  { %11 = vsyncpa [#allocation4], 0  ;;  %s348_s14 = scalar_lea.hbm %s614_s0, 16 }
   0x4   :  { %p349_p0 = scmp.ne.s32.totalorder %s614_s0, %s348_s14  ;;  %p352_p1 = scmp.lt.u32.totalorder %s348_s14, %s614_s0 }
   0x6   :  { %p354_p2 = pnand %p352_p1, %p349_p0 }
   0x8   :  { %357 = shalt.err (!%p354_p2)
}
   0x9   :  { %s432_s19 = smov [#allocation2]   ;;  %s433_s22 = smov [#allocation6]  }
   0xa   :  { %19 = dma.hbm_to_smem %s614_s0, 16, %s432_s19, [#allocation5]  }
   0xb   :  { %s25_s23 = sshll.u32 %s433_s22, 4  ;;  %s358_s26 = scalar_lea.hbm %s615_s1, 384  ;;  %s26_s23 = int_to_ptr.vmem [resolvable:$true] %s25_s23 }
   0xc   :  { %p359_p3 = scmp.ne.s32.totalorder %s615_s1, %s358_s26  ;;  %p362_p4 = scmp.lt.u32.totalorder %s358_s26, %s615_s1 }
   0xe   :  { %p364_p5 = pnand %p362_p4, %p359_p3 }
  0x10   :  { %367 = shalt.err (!%p364_p5)
}
  0x11   :  { %s368_s4 = scalar_lea.vmem %s26_s23, 384  ;;  %p373_p7 = scmp.lt.s32.totalorder %s26_s23, %s26_s23 }
  0x12   :  { %p369_p6 = scmp.ne.s32.totalorder %s26_s23, %s368_s4  ;;  %p374_p8 = scmp.lt.s32.totalorder %s368_s4, %s368_s4 }
  0x14   :  { %p375_p9 = por %p374_p8, %p373_p7 }
  0x16   :  { %p376_p10 = pnand %p375_p9, %p369_p6 }
  0x18   :  { %379 = shalt.err (!%p376_p10)
}
  0x19   :  { %s434_s0 = smov 128   ;;  %s435_s5 = smov 8  }
  0x1a   :  { %31 = dma.hbm_to_vmem [thread:$0]  %s615_s1, 384, %s26_s23, [#allocation3], %s434_s0, %s434_s0, %s435_s5  }
  0x1b   :  { %s436_s8 = smov [#allocation7]   ;;  %s380_s12 = scalar_lea.hbm %s616_s2, 128 }
  0x1c   :  { %s38_s9 = sshll.u32 %s436_s8, 4  ;;  %p381_p11 = scmp.ne.s32.totalorder %s616_s2, %s380_s12  ;;  %s39_s9 = int_to_ptr.vmem [resolvable:$true] %s38_s9 }
  0x1d   :  { %p384_p12 = scmp.lt.u32.totalorder %s380_s12, %s616_s2 }
  0x1f   :  { %p386_p13 = pnand %p384_p12, %p381_p11 }
  0x21   :  { %389 = shalt.err (!%p386_p13)
}
  0x22   :  { %s390_s17 = scalar_lea.vmem %s39_s9, 128  ;;  %p395_p1 = scmp.lt.s32.totalorder %s39_s9, %s39_s9 }
  0x23   :  { %p391_p0 = scmp.ne.s32.totalorder %s39_s9, %s390_s17  ;;  %p396_p2 = scmp.lt.s32.totalorder %s390_s17, %s390_s17 }
  0x25   :  { %p397_p3 = por %p396_p2, %p395_p1 }
  0x27   :  { %p398_p4 = pnand %p397_p3, %p391_p0 }
  0x29   :  { %401 = shalt.err (!%p398_p4)
}
  0x2a   :  { %41 = dma.hbm_to_vmem [thread:$0]  %s616_s2, 128, %s39_s9, [#allocation8]  }
  0x2b   :  { %424 = dma.done.wait [#allocation5], 16  }
  0x2c   :  { %425 = vsyncadd [#allocation5], 4294967280 }
  0x2d   :  { %426 = dma.done.wait [#allocation3], 384  }
  0x2e   :  { %427 = vsyncadd [#allocation3], 4294966912 }
  0x2f   :  { %428 = dma.done.wait [#allocation8], 128  }
  0x30   :  { %429 = vsyncadd [#allocation8], 4294967168 }
  0x31   :  { %51 = sfence }
  0x32   :  { %s497_s19 = sld [smem:[#allocation2 + $0xc]]  ;;  %s58_s20 = sld [smem:[#allocation2]]  ;;  %v52_v0 = vld [vmem:[#allocation6] sm:$0xff]  ;;  %v54_v1 = vld [vmem:[#allocation6 + $0x8] sm:$0xff]  ;;  %v56_v2 = vld [vmem:[#allocation6 + $0x10] sm:$0xff] }
  0x33   :  { %s287_s21 = sld [smem:[#allocation2 + $0x1]]  ;;  %s288_s22 = sld [smem:[#allocation2 + $0x2]] }
  0x34   :  { %s499_s23 = sld [smem:[#allocation2 + $0xd]]  ;;  %s290_s24 = sld [smem:[#allocation2 + $0x3]] }
  0x35   :  { %s291_s25 = sld [smem:[#allocation2 + $0x4]]  ;;  %s501_s26 = sld [smem:[#allocation2 + $0x5]] }
  0x36   :  { %s503_s2 = sld [smem:[#allocation2 + $0xe]]  ;;  %s507_s28 = sld [smem:[#allocation2 + $0x7]] }
  0x37   :  { %s505_s27 = sld [smem:[#allocation2 + $0x6]]  ;;  %s509_s29 = sld [smem:[#allocation2 + $0x8]] }
  0x38   :  { %s511_s30 = sld [smem:[#allocation2 + $0xf]]  ;;  %v59_v3 = vstv %s58_s20  ;;  %v61_v4 = vstv %s497_s19  ;;  %s514_s4 = sld [smem:[#allocation2 + $0x9]] }
  0x39   :  { %v64_v5 = vstv %s287_s21  ;;  %s516_s6 = sld [smem:[#allocation2 + $0xa]]  ;;  %v60_v6 = vmul.f32 %v59_v3, %v52_v0  ;;  %v68_v8 = vstv %s288_s22  ;;  %s518_s7 = sld [smem:[#allocation2 + $0xb]] }
  0x3a   :  { %v65_v7 = vmul.f32 %v64_v5, %v54_v1  ;;  %s520_s8 = sld [smem:[#allocation2 + $0x20]]  ;;  %v69_v9 = vmul.f32 %v68_v8, %v56_v2  ;;  %v74_v10 = vstv %s290_s24  ;;  %v76_v11 = vstv %s499_s23  ;;  %s525_s10 = sld [smem:[#allocation2 + $0x11]] }
  0x3b   :  { %v79_v12 = vstv %s291_s25  ;;  %s523_s9 = sld [smem:[#allocation2 + $0x10]]  ;;  %v62_v13 = vadd.f32 %v61_v4, %v60_v6  ;;  %v75_v14 = vmul.f32 %v74_v10, %v52_v0  ;;  %v83_v16 = vstv %s501_s26  ;;  %s528_s11 = sld [smem:[#allocation2 + $0x12]] }
  0x3c   :  { %v80_v15 = vmul.f32 %v79_v12, %v54_v1  ;;  %s530_s12 = sld [smem:[#allocation2 + $0x13]]  ;;  %v84_v17 = vmul.f32 %v83_v16, %v56_v2  ;;  %v91_v19 = vstv %s503_s2  ;;  %v94_v20 = vstv %s507_s28  ;;  %s535_s13 = sld [smem:[#allocation2 + $0x21]] }
  0x3d   :  { %v89_v18 = vstv %s505_s27  ;;  %s537_s14 = sld [smem:[#allocation2 + $0x14]]  ;;  %v66_v21 = vadd.f32 %v65_v7, %v62_v13  ;;  %v77_v22 = vadd.f32 %v76_v11, %v75_v14  ;;  %v95_v24 = vmul.f32 %v94_v20, %v54_v1  ;;  %s539_s15 = sld [smem:[#allocation2 + $0x15]] }
  0x3e   :  { %v90_v23 = vmul.f32 %v89_v18, %v52_v0  ;;  %v98_v25 = vstv %s509_s29  ;;  %v104_v26 = vstv %s514_s4  ;;  %v106_v27 = vstv %s511_s30  ;;  %s545_s16 = sld [smem:[#allocation2 + $0x16]]  ;;  %s547_s17 = sld [smem:[#allocation2 + $0x17]] }
  0x3f   :  { %v109_v28 = vstv %s516_s6  ;;  %v70_v29 = vadd.f32 %v69_v9, %v66_v21  ;;  %v81_v30 = vadd.f32 %v80_v15, %v77_v22  ;;  %v99_v32 = vmul.f32 %v98_v25, %v56_v2  ;;  %s549_s1 = sld [smem:[#allocation2 + $0x22]]  ;;  %s553_s18 = sld [smem:[#allocation2 + $0x18]] }
  0x40   :  { %v92_v31 = vadd.f32 %v91_v19, %v90_v23  ;;  %v105_v33 = vmul.f32 %v104_v26, %v52_v0  ;;  %v110_v34 = vmul.f32 %v109_v28, %v54_v1  ;;  %v113_v35 = vstv %s518_s7  ;;  %s555_s19 = sld [smem:[#allocation2 + $0x19]]  ;;  %s560_s20 = sld [smem:[#allocation2 + $0x1a]] }
  0x41   :  { %v119_v36 = vstv %s523_s9  ;;  %v71_v37 = vmax.f32 %v70_v29, 0.0  ;;  %v85_v38 = vadd.f32 %v84_v17, %v81_v30  ;;  %v114_v40 = vmul.f32 %v113_v35, %v56_v2  ;;  %s562_s21 = sld [smem:[#allocation2 + $0x1b]]  ;;  %s570_s23 = sld [smem:[#allocation2 + $0x1c]] }
  0x42   :  { %v96_v39 = vadd.f32 %v95_v24, %v92_v31  ;;  %v107_v41 = vadd.f32 %v106_v27, %v105_v33  ;;  %v121_v42 = vstv %s520_s8  ;;  %v124_v43 = vstv %s525_s10  ;;  %s565_s22 = sld [smem:[#allocation2 + $0x23]]  ;;  %s572_s24 = sld [smem:[#allocation2 + $0x1d]] }
  0x43   :  { %v128_v44 = vstv %s528_s11  ;;  %v86_v45 = vmax.f32 %v85_v38, 0.0  ;;  %v120_v47 = vmul.f32 %v119_v36, %v71_v37  ;;  %v132_v48 = vstv %s530_s12  ;;  %s576_s25 = sld [smem:[#allocation2 + $0x1e]]  ;;  %s578_s26 = sld [smem:[#allocation2 + $0x1f]] }
  0x44   :  { %v100_v46 = vadd.f32 %v99_v32, %v96_v39  ;;  %v111_v49 = vadd.f32 %v110_v34, %v107_v41  ;;  %v138_v50 = vstv %s537_s14  ;;  %v140_v51 = vstv %s535_s13  ;;  %s583_s2 = sld [smem:[#allocation2 + $0x29]]  ;;  %s587_s27 = sld [smem:[#allocation2 + $0x2a]] }
  0x45   :  { %v143_v52 = vstv %s539_s15  ;;  %v122_v54 = vadd.f32 %v121_v42, %v120_v47  ;;  %v125_v55 = vmul.f32 %v124_v43, %v86_v45  ;;  %v139_v56 = vmul.f32 %v138_v50, %v71_v37  ;;  %s589_s28 = sld [smem:[#allocation2 + $0x2b]]  ;;  %s328_s29 = sld [smem:[#allocation2 + $0x2c]] }
  0x46   :  { %v101_v53 = vmax.f32 %v100_v46, 0.0  ;;  %v115_v57 = vadd.f32 %v114_v40, %v111_v49  ;;  %v144_v58 = vmul.f32 %v143_v52, %v86_v45  ;;  %v147_v59 = vstv %s545_s16  ;;  %s330_s30 = sld [smem:[#allocation2 + $0x2d]]  ;;  %s321_s4 = sld [smem:[#allocation2 + $0x24]] }
  0x47   :  { %v151_v60 = vstv %s547_s17  ;;  %v126_v61 = vadd.f32 %v125_v55, %v122_v54  ;;  %v141_v63 = vadd.f32 %v140_v51, %v139_v56  ;;  %v157_v2 = vstv %s553_s18  ;;  %s323_s6 = sld [smem:[#allocation2 + $0x25]]  ;;  %s325_s7 = sld [smem:[#allocation2 + $0x26]] }
  0x48   :  { %v129_v62 = vmul.f32 %v128_v44, %v101_v53  ;;  %v148_v0 = vmul.f32 %v147_v59, %v101_v53  ;;  %v116_v1 = vmax.f32 %v115_v57, 0.0  ;;  %v159_v3 = vstv %s549_s1  ;;  %s327_s8 = sld [smem:[#allocation2 + $0x27]]  ;;  %s329_s9 = sld [smem:[#allocation2 + $0x28]] }
  0x49   :  { %v162_v4 = vstv %s555_s19  ;;  %v145_v6 = vadd.f32 %v144_v58, %v141_v63  ;;  %v158_v7 = vmul.f32 %v157_v2, %v71_v37  ;;  %v166_v11 = vstv %s560_s20  ;;  %s437_s10 = smov [#allocation9]  }
  0x4a   :  { %v130_v5 = vadd.f32 %v129_v62, %v126_v61  ;;  %v163_v8 = vmul.f32 %v162_v4, %v86_v45  ;;  %v133_v9 = vmul.f32 %v132_v48, %v116_v1  ;;  %v152_v10 = vmul.f32 %v151_v60, %v116_v1  ;;  %s272_s11 = sshll.u32 %s437_s10, 4  ;;  %s273_s11 = int_to_ptr.vmem [resolvable:$true] %s272_s11 }
  0x4b   :  { %v170_v12 = vstv %s562_s21  ;;  %v149_v13 = vadd.f32 %v148_v0, %v145_v6  ;;  %v160_v14 = vadd.f32 %v159_v3, %v158_v7  ;;  %v167_v15 = vmul.f32 %v166_v11, %v101_v53  ;;  %s402_s12 = scalar_lea.vmem %s273_s11, 384  ;;  %p407_p6 = scmp.lt.s32.totalorder %s273_s11, %s273_s11 }
  0x4c   :  { %v171_v16 = vmul.f32 %v170_v12, %v116_v1  ;;  %v134_v17 = vadd.f32 %v133_v9, %v130_v5  ;;  %v176_v18 = vstv %s570_s23  ;;  %v178_v19 = vstv %s565_s22  ;;  %p403_p5 = scmp.ne.s32.totalorder %s273_s11, %s402_s12  ;;  %p408_p7 = scmp.lt.s32.totalorder %s402_s12, %s402_s12 }
  0x4d   :  { %v181_v20 = vstv %s572_s24  ;;  %v153_v21 = vadd.f32 %v152_v10, %v149_v13  ;;  %v164_v22 = vadd.f32 %v163_v8, %v160_v14  ;;  %v177_v23 = vmul.f32 %v176_v18, %v71_v37  ;;  %v243_v10 = vld [vmem:[#allocation7] sm:$0xff] }
  0x4e   :  { %v182_v24 = vmul.f32 %v181_v20, %v86_v45  ;;  %v135_v25 = vmax.f32 %v134_v17, 0.0  ;;  %v185_v26 = vstv %s576_s25  ;;  %v189_v27 = vstv %s578_s26  ;;  %p409_p8 = por %p408_p7, %p407_p6 }
  0x4f   :  { %v154_v28 = vmax.f32 %v153_v21, 0.0  ;;  %v168_v29 = vadd.f32 %v167_v15, %v164_v22  ;;  %v179_v30 = vadd.f32 %v178_v19, %v177_v23  ;;  %v186_v31 = vmul.f32 %v185_v26, %v101_v53 }
  0x50   :  { %v197_v32 = vstv %s583_s2  ;;  %v190_v35 = vmul.f32 %v189_v27, %v116_v1  ;;  %v204_v38 = vstv %s587_s27  ;;  %v212_v39 = vstv %s589_s28  ;;  %p410_p9 = pnand %p409_p8, %p403_p5 }
  0x51   :  { %v172_v33 = vadd.f32 %v171_v16, %v168_v29  ;;  %v183_v34 = vadd.f32 %v182_v24, %v179_v30  ;;  %v198_v36 = vmul.f32 %v197_v32, %v135_v25  ;;  %v205_v41 = vmul.f32 %v204_v38, %v154_v28 }
  0x52   :  { %v220_v45 = vstv %s328_s29  ;;  %v227_v49 = vstv %s330_s30  ;;  %v194_v54 = vstv %s321_s4  ;;  %v200_v55 = vstv %s323_s6 }
  0x53   :  { %v173_v40 = vmax.f32 %v172_v33, 0.0  ;;  %v187_v37 = vadd.f32 %v186_v31, %v183_v34  ;;  %v206_v43 = vadd.f32 %v205_v41, %v198_v36  ;;  %v195_v57 = vmul.f32 %v194_v54, %v135_v25 }
  0x54   :  { %v201_v58 = vmul.f32 %v200_v55, %v154_v28  ;;  %v208_v59 = vstv %s325_s7  ;;  %v216_v0 = vstv %s327_s8  ;;  %v224_v8 = vstv %s329_s9 }
  0x55   :  { %v191_v42 = vadd.f32 %v190_v35, %v187_v37  ;;  %v213_v44 = vmul.f32 %v212_v39, %v173_v40  ;;  %v209_v62 = vmul.f32 %v208_v59, %v173_v40  ;;  %v249_v24 = vmul.f32 %v243_v10, %v243_v10 }
  0x56   :  { %v202_v61 = vadd.f32 %v201_v58, %v195_v57 }
  0x57   :  { %v192_v46 = vmax.f32 %v191_v42, 0.0  ;;  %v214_v47 = vadd.f32 %v213_v44, %v206_v43  ;;  %v250_v26 = vmul.f32 -0.5, %v249_v24 }
  0x58   :  { %v210_v1 = vadd.f32 %v209_v62, %v202_v61 }
  0x59   :  { %v221_v48 = vmul.f32 %v220_v45, %v192_v46  ;;  %v217_v2 = vmul.f32 %v216_v0, %v192_v46 }
  0x5b   :  { %v222_v50 = vadd.f32 %v221_v48, %v214_v47  ;;  %v218_v5 = vadd.f32 %v217_v2, %v210_v1 }
  0x5d   :  { %v228_v51 = vadd.f32 %v227_v49, %v222_v50  ;;  %v225_v11 = vadd.f32 %v224_v8, %v218_v5 }
  0x5f   :  { %v230_v52 = vmin.f32 %v228_v51, 20.0  ;;  %vm229_vm1 = vcmp.gt.f32.partialorder %v228_v51, 20.0 }
  0x61   :  { %v231_v53 = vmul.f32 1.442695, %v230_v52 }
  0x63   :  { %338 = vpow2.f32 %v231_v53 }
  0x6d   :  { %v339_v56 = vpop.eup %338 }
  0x6e   :  { %v233_v60 = vadd.f32 1.0, %v339_v56  ;;  %v236_v63 = vmul.f32 -0.5, %v339_v56  ;;  %v239_v4 = vand.u32 2147483647, %v339_v56 }
  0x70   :  { %340 = vlog2.f32 %v233_v60  ;;  %v237_v3 = vadd.f32 1.0, %v236_v63  ;;  %vm240_vm0 = vcmp.lt.f32.partialorder %v239_v4, 0.0004427343 }
  0x72   :  { %v238_v6 = vmul.f32 %v339_v56, %v237_v3 }
  0x7a   :  { %v341_v7 = vpop.eup %340 }
  0x7b   :  { %v235_v9 = vmul.f32 0.6931472, %v341_v7 }
  0x7d   :  { %v241_v12 = vsel %vm240_vm0, %v238_v6, %v235_v9 }
  0x7e   :  { %v242_v13 = vsel %vm229_vm1, %v228_v51, %v241_v12 }
  0x7f   :  { %v244_v14 = vmul.f32 %v243_v10, %v242_v13  ;;  %342 = vlog2.f32 %v242_v13 }
  0x81   :  { %v245_v15 = vadd.f32 %v244_v14, %v225_v11 }
  0x83   :  { %344 = vtanh.f32 %v245_v15 }
  0x89   :  { %v343_v16 = vpop.eup %342 }
  0x8a   :  { %v247_v17 = vmul.f32 0.6931472, %v343_v16 }
  0x8c   :  { %v248_v18 = vadd.f32 1.4189385, %v247_v17  ;;  %v251_v27 = vsub.f32 %v250_v26, %v247_v17 }
  0x8d   :  { %v345_v19 = vpop.eup %344 }
  0x8e   :  { %v261_v20 = vmul.f32 4.0, %v345_v19  ;;  %264 = vst [vmem:[#allocation9 + $0x10] sm:$0xff] %v248_v18  ;;  %v254_v21 = vmul.f32 %v345_v19, %v345_v19  ;;  %v331_v28 = vadd.f32 -0.9189385, %v251_v27 }
  0x90   :  { %262 = vst [vmem:[#allocation9] sm:$0xff] %v261_v20  ;;  %v255_v22 = vsub.f32 1.0, %v254_v21 }
  0x92   :  { %v256_v23 = vmul.f32 4.0, %v255_v22 }
  0x94   :  { %v257_v25 = vadd.f32 1e-06, %v256_v23 }
  0x96   :  { %346 = vlog2.f32 %v257_v25 }
  0xa0   :  { %v347_v29 = vpop.eup %346 }
  0xa1   :  { %v259_v30 = vmul.f32 0.6931472, %v347_v29 }
  0xa3   :  { %v260_v31 = vsub.f32 %v331_v28, %v259_v30 }
  0xa5   :  { %266 = vst [vmem:[#allocation9 + $0x8] sm:$0xff] %v260_v31 }
  0xa6   :  { %413 = shalt.err (!%p410_p9)
}
  0xa7   :  { %s414_s15 = scalar_lea.hbm %s617_s3, 384 }
  0xa8   :  { %p415_p10 = scmp.ne.s32.totalorder %s617_s3, %s414_s15  ;;  %p418_p11 = scmp.lt.u32.totalorder %s414_s15, %s617_s3 }
  0xaa   :  { %p420_p12 = pnand %p418_p11, %p415_p10 }
  0xac   :  { %423 = shalt.err (!%p420_p12)
}
  0xad   :  { %278 = dma.vmem_to_hbm [thread:$0]  %s273_s11, 384, %s617_s3, [#allocation4], %s434_s0, %s434_s0, %s435_s5  }
  0xae   :  { %430 = dma.done.wait [#allocation4], 384  }
  0xaf   :  { %431 = vsyncadd [#allocation4], 4294966912 }
  0xb0   :  { %282 = vsyncpa [#allocation3], 1 }
  0xb1   :  { %283 = vsyncpa [#allocation8], 1 }
  0xb2   :  { %284 = vsyncpa [#allocation4], 1 }
  0xb3   :  { %285 = vsyncpa [#allocation5], 1 }

</bundles_post_ra>
